<compile_context>
chip_gen: v6e
topology: v6e:2x2x1
jax: 0.10.0
libtpu: 0.0.40
codegen_flags: <defaults>
</compile_context>

<pallas_src>
import jax
import jax.numpy as jnp
from jax.experimental import pallas as pl
from jax.experimental.pallas import tpu as pltpu


def _ofa_gemm_kernel(p_ref, w_ref, t_ref, o_ref):
    """Single fused GEMM + epilogue (whole problem in one step).

    p_ref: (K*K*Cin, N*Ho*Wo)  transposed im2col patches (rows ordered cin,kh,kw)
    w_ref: (Cout, K*K*Cin)     scale-folded weight matrix (cols ordered cin,kh,kw)
    t_ref: (Cout, 1)           fused shift = ((bias - mean)*gamma/sqrt(var+eps) + beta)/4
    o_ref: (Cout, N*Ho*Wo)     lane-dense output (one (8,128) vreg at these sizes)
    """
    acc = jnp.dot(w_ref[...], p_ref[...], preferred_element_type=jnp.float32)
    acc = acc + t_ref[...]                 # conv bias + eval-mode BN + /4 (all folded)
    acc = jnp.maximum(acc, 0.0)            # ReLU
    acc = jnp.minimum(acc, 127.0 / 128.0)  # AI8X clamp upper bound (lower bound dead after ReLU)
    o_ref[...] = acc


def _select_weight(w_oihw, kernel_size):
    """OFA elastic-kernel weight selection (2d case of the module)."""
    cout, cin, kmax, _ = w_oihw.shape
    if kernel_size == kmax:
        return w_oihw, kmax // 2  # max_pad_size
    # kernel_list = [1], padding_list = [0]; ktm is (kmax^2, 1), center-initialized.
    ktm = jnp.zeros((kmax * kmax, 1), jnp.float32).at[(kmax * kmax) // 2, 0].set(1.0)
    flat = w_oihw.reshape(cout, cin, 1, kmax * kmax)
    w_red = jnp.matmul(flat, ktm)          # (Cout, Cin, 1, 1)
    return w_red, 0


def ofa_forward(x_nchw, params, kernel_size):
    """JAX/Pallas forward of OnceForAllModule (returns NCHW, like PyTorch)."""
    n, cin, h, w_sp = x_nchw.shape
    weight, pad = _select_weight(params["weight"].astype(jnp.float32), kernel_size)
    cout, _, k, _ = weight.shape

    # --- glue (tiny, XLA-fused): MaxPool2d(2,2) in NCHW, channel-major, pad, im2col ---
    # (quantize_pool / clamp_pool are identity for pooling='Max', eval mode)
    hp, wp = h // 2, w_sp // 2
    x = x_nchw.astype(jnp.float32).reshape(n, cin, hp, 2, wp, 2).max(axis=(3, 5))
    x = jnp.transpose(x, (1, 0, 2, 3))                                  # (Cin, N, Hp, Wp)
    if pad:
        x = jnp.pad(x, ((0, 0), (0, 0), (pad, pad), (pad, pad)))

    ho = hp + 2 * pad - k + 1
    wo = wp + 2 * pad - k + 1
    cols = n * ho * wo
    kkc = k * k * cin

    # Transposed im2col: row index = cin*(K*K) + kh*K + kw -> matches weight.reshape below.
    patches_t = jnp.stack(
        [x[:, :, kh:kh + ho, kw:kw + wo] for kh in range(k) for kw in range(k)],
        axis=1,
    ).reshape(kkc, cols)

    # --- parameter folding (host side): bias + eval-mode BN + /4 ---
    inv = 1.0 / jnp.sqrt(params["bn_var"] + params["bn_eps"])
    scale = (params["bn_gamma"] * inv / 4.0).astype(jnp.float32)        # (Cout,)
    shift = (((params["bias"] - params["bn_mean"]) * params["bn_gamma"] * inv
              + params["bn_beta"]) / 4.0).reshape(cout, 1).astype(jnp.float32)
    # Fold the per-channel scale into the weight rows: (W*diag(s)) @ P == diag(s)*(W @ P).
    w_t = (weight.reshape(cout, kkc) * scale[:, None]).astype(jnp.float32)

    out = pl.pallas_call(
        _ofa_gemm_kernel,
        out_shape=jax.ShapeDtypeStruct((cout, cols), jnp.float32),
        grid=(1,),
        in_specs=[
            pl.BlockSpec((kkc, cols), lambda i: (0, 0)),
            pl.BlockSpec((cout, kkc), lambda i: (0, 0)),
            pl.BlockSpec((cout, 1), lambda i: (0, 0)),
        ],
        out_specs=pl.BlockSpec((cout, cols), lambda i: (0, 0)),
        compiler_params=pltpu.CompilerParams(dimension_semantics=("arbitrary",)),
    )(patches_t, w_t, shift)

    # (Cout, N*Ho*Wo) -> NCHW: leading-axis swap only.
    return jnp.transpose(out.reshape(cout, n, ho, wo), (1, 0, 2, 3))


def ofa_reference(x, params, kernel_size):
    """Plain-JAX reference mirroring the PyTorch forward (for validation)."""
    n, c, h, w_sp = x.shape
    xp = x.reshape(n, c, h // 2, 2, w_sp // 2, 2).max(axis=(3, 5))
    weight, pad = _select_weight(params["weight"], kernel_size)
    y = jax.lax.conv_general_dilated(
        xp, weight, window_strides=(1, 1), padding=[(pad, pad), (pad, pad)],
        dimension_numbers=("NCHW", "OIHW", "NCHW"),
        precision=jax.lax.Precision.HIGHEST,
    )
    y = y + params["bias"][None, :, None, None]
    inv = 1.0 / jnp.sqrt(params["bn_var"] + params["bn_eps"])
    y = ((y - params["bn_mean"][None, :, None, None]) * inv[None, :, None, None]
         * params["bn_gamma"][None, :, None, None] + params["bn_beta"][None, :, None, None])
    y = y / 4.0
    y = jnp.maximum(y, 0.0)
    y = jnp.clip(y, -1.0, 127.0 / 128.0)
    return y


if __name__ == "__main__":
    key = jax.random.PRNGKey(0)
    N, CIN, H, W = 2, 4, 16, 16
    COUT, KMAX = 8, 3

    ks = jax.random.split(key, 7)
    x = jax.random.normal(ks[0], (N, CIN, H, W), jnp.float32)
    params = dict(
        weight=0.3 * jax.random.normal(ks[1], (COUT, CIN, KMAX, KMAX), jnp.float32),
        bias=0.1 * jax.random.normal(ks[2], (COUT,), jnp.float32),
        bn_gamma=1.0 + 0.1 * jax.random.normal(ks[3], (COUT,), jnp.float32),
        bn_beta=0.1 * jax.random.normal(ks[4], (COUT,), jnp.float32),
        bn_mean=0.1 * jax.random.normal(ks[5], (COUT,), jnp.float32),
        bn_var=jnp.abs(jax.random.normal(ks[6], (COUT,), jnp.float32)) + 0.5,
        bn_eps=1e-5,
    )

    # kernel_size = 3: full-kernel path; kernel_size = 1: OFA elastic-kernel (ktm) path.
    for ksize in (3, 1):
        out = jax.block_until_ready(ofa_forward(x, params, kernel_size=ksize))
        ref = ofa_reference(x, params, kernel_size=ksize)
        assert out.shape == ref.shape, (ksize, out.shape, ref.shape)
        err = float(jnp.max(jnp.abs(out - ref)))
        assert err < 2e-2, (ksize, err)

    print("KERNEL_OK")
</pallas_src>

<mosaic_0001>
module attributes {stable_mosaic.version = 11 : i64} {
  func.func @_ofa_gemm_kernel(%arg0: i32, %arg1: memref<36x128xf32, #tpu.memory_space<vmem>>, %arg2: memref<8x36xf32, #tpu.memory_space<vmem>>, %arg3: memref<8x1xf32, #tpu.memory_space<vmem>>, %arg4: memref<8x128xf32, #tpu.memory_space<vmem>>) attributes {dimension_semantics = [#tpu.dimension_semantics<arbitrary>], iteration_bounds = array<i64: 1>, scalar_prefetch = 0 : i64, scratch_operands = 0 : i64, tpu.core_type = #tpu.core_type<tc>, window_params = [{pipeline_mode = #tpu.pipeline_mode<synchronous>, transform_indices = @transform_0, window_bounds = array<i64: 36, 128>}, {pipeline_mode = #tpu.pipeline_mode<synchronous>, transform_indices = @transform_1, window_bounds = array<i64: 8, 36>}, {pipeline_mode = #tpu.pipeline_mode<synchronous>, transform_indices = @transform_2, window_bounds = array<i64: 8, 1>}, {pipeline_mode = #tpu.pipeline_mode<synchronous>, transform_indices = @transform_3, window_bounds = array<i64: 8, 128>}]} {
    %c0 = arith.constant 0 : index
    %c0_0 = arith.constant 0 : index
    %0 = vector.load %arg2[%c0, %c0_0] : memref<8x36xf32, #tpu.memory_space<vmem>>, vector<8x36xf32>
    %c0_1 = arith.constant 0 : index
    %c0_2 = arith.constant 0 : index
    %1 = vector.load %arg1[%c0_1, %c0_2] : memref<36x128xf32, #tpu.memory_space<vmem>>, vector<36x128xf32>
    %cst = arith.constant dense<0.000000e+00> : vector<8x128xf32>
    %2 = tpu.matmul %0, %1, %cst {dimension_numbers = #tpu.dot_dimension_numbers<[1], [0], [0], [1], [0, 0, 1, 1], [], []>} : vector<8x36xf32>, vector<36x128xf32>, vector<8x128xf32> -> vector<8x128xf32>
    %c0_3 = arith.constant 0 : index
    %c0_4 = arith.constant 0 : index
    %3 = vector.load %arg3[%c0_3, %c0_4] : memref<8x1xf32, #tpu.memory_space<vmem>>, vector<8x1xf32>
    %4 = vector.broadcast %3 : vector<8x1xf32> to vector<8x128xf32>
    %5 = arith.addf %2, %4 : vector<8x128xf32>
    %cst_5 = arith.constant 0.000000e+00 : f32
    %6 = vector.broadcast %cst_5 : f32 to vector<8x128xf32>
    %7 = arith.maximumf %5, %6 : vector<8x128xf32>
    %cst_6 = arith.constant 0.9921875 : f32
    %8 = vector.broadcast %cst_6 : f32 to vector<8x128xf32>
    %9 = arith.minimumf %7, %8 : vector<8x128xf32>
    %c0_7 = arith.constant 0 : index
    %c0_8 = arith.constant 0 : index
    %10 = vector.load %arg4[%c0_7, %c0_8] : memref<8x128xf32, #tpu.memory_space<vmem>>, vector<8x128xf32>
    tpu.vector_store %arg4[%c0_7, %c0_8], %9 {strides = array<i32>} : memref<8x128xf32, #tpu.memory_space<vmem>>, vector<8x128xf32>,
    return
  }
  func.func @transform_0(%arg0: i32) -> (i32, i32) {
    %c0_i32 = arith.constant 0 : i32
    %c0_i32_0 = arith.constant 0 : i32
    %c0_i32_1 = arith.constant 0 : i32
    return %c0_i32, %c0_i32_0 : i32, i32
  }
  func.func @transform_1(%arg0: i32) -> (i32, i32) {
    %c0_i32 = arith.constant 0 : i32
    %c0_i32_0 = arith.constant 0 : i32
    %c0_i32_1 = arith.constant 0 : i32
    return %c0_i32, %c0_i32_0 : i32, i32
  }
  func.func @transform_2(%arg0: i32) -> (i32, i32) {
    %c0_i32 = arith.constant 0 : i32
    %c0_i32_0 = arith.constant 0 : i32
    %c0_i32_1 = arith.constant 0 : i32
    return %c0_i32, %c0_i32_0 : i32, i32
  }
  func.func @transform_3(%arg0: i32) -> (i32, i32) {
    %c0_i32 = arith.constant 0 : i32
    %c0_i32_0 = arith.constant 0 : i32
    %c0_i32_1 = arith.constant 0 : i32
    return %c0_i32, %c0_i32_0 : i32, i32
  }
}

</mosaic_0001>

<bundles_post_ra>
// kernel: tpu_custom_call.1
= control target key start
LH: loop header
LB: loop body
LE: loop exit
PB: predicated region body
PF: predicated region fallthrough
CT: control target
= control target key end

     0   :  { %8 = vsyncpa [#allocation3], 0  ;;  %s249_s0 = inlined_call_operand.hbm [shape: f32[36,128], index: 0, kind: input, shape index: {}]   ;;  %s250_s1 = inlined_call_operand.vmem [shape: f32[8,36], index: 1, kind: input, shape index: {}]   ;;  %s251_s2 = inlined_call_operand.vmem [shape: f32[8,1], index: 2, kind: input, shape index: {}]   ;;  %s252_s3 = inlined_call_operand.hbm [shape: f32[8,128], index: 3, kind: output, shape index: {}]  }
   0x1   :  { %9 = vsyncpa [#allocation4], 0  ;;  %s210_s12 = smov [#allocation2]  }
   0x2   :  { %s15_s13 = sshll.u32 %s210_s12, 4  ;;  %s16_s13 = int_to_ptr.vmem [resolvable:$true] %s15_s13 }
   0x3   :  { %s174_s14 = scalar_lea.vmem %s16_s13, 640  ;;  %p179_p1 = scmp.lt.s32.totalorder %s16_s13, %s16_s13 }
   0x4   :  { %p175_p0 = scmp.ne.s32.totalorder %s16_s13, %s174_s14  ;;  %p180_p2 = scmp.lt.s32.totalorder %s174_s14, %s174_s14 }
   0x6   :  { %p181_p3 = por %p180_p2, %p179_p1 }
   0x8   :  { %p182_p4 = pnand %p181_p3, %p175_p0 }
   0xa   :  { %185 = shalt.err (!%p182_p4)
}
   0xb   :  { %s211_s15 = smov 128   ;;  %s212_s16 = smov 8  }
   0xc   :  { %21 = dma.hbm_to_vmem [thread:$0]  %s249_s0, 640, %s16_s13, [#allocation3], %s211_s15, %s211_s15, %s212_s16  }
   0xd   :  { %206 = dma.done.wait [#allocation3], 640  }
   0xe   :  { %207 = vsyncadd [#allocation3], 4294966656  ;;  %v213_v0 = vmov 0.0   ;;  %vm214_vm0 = vmmov 0   ;;  %v215_v1 = vmov 0   ;;  %vm45_vm1 = vcmask 1043456  }
   0xf   :  { %145 = vmatprep.subr.mxu0 %v213_v0  ;;  %155 = vmatprep.mubr.msk.f32.mxu0 %vm214_vm0, %v213_v0  ;;  %v34_v2 = vld [vmem:[#allocation2 + $0x20] sm:$0xf]  ;;  %v33_v3 = vld [vmem:[#allocation2 + $0x18] sm:$0xff]  ;;  %v32_v4 = vld [vmem:[#allocation2 + $0x10] sm:$0xff]  ;;  %vm41_vm2 = vcmask 293888  }
  0x10   :  { %165 = vset.pattern.permute.xlu0 %v215_v1  ;;  %146 = vmatpush3.msk.msra.mxu0 %vm45_vm1, %v34_v2  ;;  %v35_v5 = vld [vmem:[%s251_s2] sm:$0xff]  ;;  %v31_v6 = vld [vmem:[#allocation2 + $0x8] sm:$0xff]  ;;  %s216_s2 = smov [#allocation5]  }
  0x11   :  { %147 = vmatprep.subr.mxu0 %v213_v0  ;;  %38 = vperm.xlu0 %165, %v35_v5   ;;  %v30_v7 = vld [vmem:[#allocation2] sm:$0xff]  ;;  %s128_s22 = sshll.u32 %s216_s2, 4  ;;  %s129_s22 = int_to_ptr.vmem [resolvable:$true] %s128_s22 }
  0x12   :  { %148 = vmatpush3.msra.mxu0 %v33_v3  ;;  %v29_v8 = vld [vmem:[%s250_s1] sm:$0xff]  ;;  %s186_s23 = scalar_lea.vmem %s129_s22, 128  ;;  %p191_p6 = scmp.lt.s32.totalorder %s129_s22, %s129_s22 }
  0x13   :  { %149 = vmatprep.subr.mxu0 %v213_v0  ;;  %p187_p5 = scmp.ne.s32.totalorder %s129_s22, %s186_s23  ;;  %p192_p7 = scmp.lt.s32.totalorder %s186_s23, %s186_s23 }
  0x14   :  { %150 = vmatpush3.msra.mxu0 %v32_v4 }
  0x15   :  { %151 = vmatprep.subr.mxu0 %v213_v0  ;;  %p193_p8 = por %p192_p7, %p191_p6 }
  0x16   :  { %152 = vmatpush3.msra.mxu0 %v31_v6 }
  0x17   :  { %153 = vmatprep.subr.mxu0 %v213_v0  ;;  %p194_p9 = pnand %p193_p8, %p187_p5 }
  0x18   :  { %154 = vmatpush3.msra.mxu0 %v30_v7 }
  0x19   :  { %156 = vmatmul.mubr.msk.f32.vlgmr.msra.gmra.mxu0 %vm41_vm2, %v29_v8 }
  0x8c   :  { %v39_v9 = vpop.permute.xlu0 %38 }
  0xd9   :  { %v115_v10 = vpop.f32.mrf.mxu0 }
  0xda   :  { %v116_v11 = vadd.f32 %v115_v10, %v39_v9 }
  0xdb   :  { %v157_v12 = vpop.f32.mrf.mxu0 }
  0xdc   :  { %v119_v13 = vmax.f32 %v116_v11, 0.0 }
  0xde   :  { %v120_v14 = vmin.f32 %v119_v13, 0.9921875 }
  0xe0   :  { %121 = vst [vmem:[#allocation5] sm:$0xff] %v120_v14 }
  0xe1   :  { %197 = shalt.err (!%p194_p9)
}
  0xe2   :  { %131 = dma.vmem_to_hbm [thread:$0]  %s129_s22, 128, %s252_s3, [#allocation4]  }
  0xe3   :  { %208 = dma.done.wait [#allocation4], 128  }
  0xe4   :  { %209 = vsyncadd [#allocation4], 4294967168 }
  0xe5   :  { %135 = vsyncpa [#allocation3], 1 }
  0xe6   :  { %136 = vsyncpa [#allocation4], 1 }

</bundles_post_ra>
